<compile_context>
chip_gen: v7x
topology: tpu7x:2x2x1
jax: 0.10.0
libtpu: 0.0.40
codegen_flags: <defaults>
</compile_context>

<pallas_src>
import numpy as np

import jax
import jax.numpy as jnp
from jax.experimental import pallas as pl
from jax.experimental.pallas import tpu as pltpu


# ---------------------------------------------------------------------------
# Helpers
# ---------------------------------------------------------------------------
def _round_up(x: int, m: int) -> int:
    return ((x + m - 1) // m) * m


def _adaptive_avg_matrix(in_size: int, out_size: int) -> np.ndarray:
    """Row-averaging matrix reproducing nn.AdaptiveAvgPool2d bin edges."""
    m = np.zeros((out_size, in_size), dtype=np.float32)
    for i in range(out_size):
        start = (i * in_size) // out_size
        end = -((-(i + 1) * in_size) // out_size)  # ceil((i+1)*in/out)
        m[i, start:end] = 1.0 / (end - start)
    return m


def _tpu_vmem_capacity():
    try:
        return int(pltpu.get_tpu_info().vmem_capacity_bytes)
    except Exception:
        return None


def _choose_k_tile(f_rounded: int, k_tile: int):
    """Pick TK (multiple of 128, <= k_tile) minimizing padded K; prefer larger TK."""
    target = max(128, min(f_rounded, _round_up(k_tile, 128)))
    best, best_padded = 128, _round_up(f_rounded, 128)
    for cand in range(128, target + 1, 128):
        padded = _round_up(f_rounded, cand)
        if padded < best_padded or (padded == best_padded and cand > best):
            best, best_padded = cand, padded
    return best, best_padded


def _vmem_footprint(tb, tk, h1p, h2p, cp, act_bytes, resident_bufs):
    stream = 2 * (tb * tk + tk * h1p) * act_bytes            # x & W1 double-buffered
    resident = resident_bufs * ((h1p * h2p + h2p * cp) * act_bytes
                                + (h1p + h2p + cp) * 4)      # W2, W3 + f32 biases
    acc = tb * h1p * 4
    out = 2 * tb * cp * 4
    return stream + resident + acc + out


# ---------------------------------------------------------------------------
# Fused MLP kernel: grid = (batch tile i [parallel], K tile k [arbitrary]).
# Layer 1 accumulates over K tiles in an f32 VMEM scratch; layers 2/3 and the
# store run once, on the last K step.
# ---------------------------------------------------------------------------
def _mlp_kernel(x_ref, w1_ref, b1_ref, w2_ref, b2_ref, w3_ref, b3_ref,
                o_ref, acc_ref):
    k = pl.program_id(1)

    @pl.when(k == 0)
    def _init():
        acc_ref[...] = jnp.zeros_like(acc_ref)

    acc_ref[...] += jnp.dot(x_ref[...], w1_ref[...],
                            preferred_element_type=jnp.float32)

    @pl.when(k == pl.num_programs(1) - 1)
    def _finalize():
        # bias add + ReLU in f32 (v5e VPU has no bf16 ALU).
        h1 = jnp.maximum(acc_ref[...] + b1_ref[...], 0.0)
        h2 = jnp.dot(h1.astype(w2_ref.dtype), w2_ref[...],
                     preferred_element_type=jnp.float32) + b2_ref[...]
        h2 = jnp.maximum(h2, 0.0)
        out = jnp.dot(h2.astype(w3_ref.dtype), w3_ref[...],
                      preferred_element_type=jnp.float32) + b3_ref[...]
        o_ref[...] = out.astype(o_ref.dtype)


# ---------------------------------------------------------------------------
# Factory: prepare weights once, return a jit-able forward(x, *prepared).
# ---------------------------------------------------------------------------
def make_pooled_mlp(params, in_ch, in_hw, pool_sz, *, use_bf16: bool = True,
                    batch_tile: int = 256, k_tile: int = 2048,
                    single_buffer_resident=None, min_batch_tiles=None):
    in_h, in_w = in_hw
    w1, b1, w2, b2, w3, b3 = params          # w: (in, out); b: (1, out)
    P = pool_sz
    F = w1.shape[0]
    assert F == in_ch * P * P, (F, in_ch, P)
    hidden, h2dim, n_classes = w1.shape[1], w2.shape[1], w3.shape[1]

    # ---- Generation-aware configuration.
    vmem_cap = _tpu_vmem_capacity()
    is_small_vmem = vmem_cap is not None and vmem_cap <= 64 * 1024 * 1024  # v7x-class
    if single_buffer_resident is None:
        single_buffer_resident = is_small_vmem
    if min_batch_tiles is None:
        min_batch_tiles = 2 if is_small_vmem else 1   # v7x: feed both TensorCores
    if vmem_cap is None:
        vmem_budget = 48 * 1024 * 1024                # conservative fallback
    elif is_small_vmem:
        vmem_budget = 52 * 1024 * 1024                # v7x: 64 MiB per TC
    else:
        vmem_budget = 96 * 1024 * 1024                # v5e/v6e: 128 MiB physical

    cdt = jnp.bfloat16 if use_bf16 else jnp.float32
    act_bytes = 2 if use_bf16 else 4
    # TODO(synk): on v7x, W1 could be stored in fp8 (e4m3) with f32 accumulation
    # to halve the dominant weight byte-stream again; not enabled by default.

    # ---- Tile sizes (pad MXU-facing dims to sublane/lane granularity).
    Fp0 = _round_up(F, 128)
    H1p = _round_up(hidden, 128)
    H2p = _round_up(h2dim, 128)
    Cp = _round_up(n_classes, 128)
    TK, Fp = _choose_k_tile(Fp0, k_tile)
    resident_bufs = 1 if single_buffer_resident else 2
    TBmax = max(8, _round_up(batch_tile, 8))

    def _fits(tb, tk):
        return _vmem_footprint(tb, tk, H1p, H2p, Cp, act_bytes,
                               resident_bufs) <= int(0.9 * vmem_budget)

    while not _fits(TBmax, TK) and TK > 128:
        TK, Fp = _choose_k_tile(Fp0, TK // 2)
    while not _fits(TBmax, TK) and TBmax > 8:
        TBmax = max(8, _round_up(TBmax // 2, 8))

    # ---- One-time weight preparation (pool matrices, padding, casts).
    def pad2(arr, rows, cols):
        r, c = arr.shape
        return jnp.pad(arr, ((0, rows - r), (0, cols - c)))

    a_mat = jnp.asarray(_adaptive_avg_matrix(in_h, P))   # (P, H)
    b_mat = jnp.asarray(_adaptive_avg_matrix(in_w, P))   # (P, W)
    prepared = (
        a_mat, b_mat,
        pad2(w1, Fp, H1p).astype(cdt),
        pad2(b1, 1, H1p).astype(jnp.float32),   # biases stay f32 (added to f32 acc)
        pad2(w2, H1p, H2p).astype(cdt),
        pad2(b2, 1, H2p).astype(jnp.float32),
        pad2(w3, H2p, Cp).astype(cdt),
        pad2(b3, 1, Cp).astype(jnp.float32),
    )

    def _resident_spec(shape):
        """Grid-invariant input; single-buffered on v7x-class chips."""
        if single_buffer_resident:
            try:
                return pl.BlockSpec(shape, lambda i, k: (0, 0),
                                    pipeline_mode=pl.Buffered(1))
            except TypeError:   # pipeline_mode not supported by this jax
                pass
        return pl.BlockSpec(shape, lambda i, k: (0, 0))

    # ---- Per-call forward.
    def forward(x, a_m, b_m, w1p, b1p, w2p, b2p, w3p, b3p):
        N, C, Hx, Wx = x.shape
        assert (C, Hx, Wx) == (in_ch, in_h, in_w), (x.shape, in_ch, in_h, in_w)

        # AdaptiveAvgPool2d + Flatten applied to activations: two tiny
        # contractions (XLA matmuls), ~P^2/(H*W) of the original bytes.
        pooled = jnp.einsum('ph,nchw,qw->ncpq', a_m, x, b_m)
        feats = pooled.reshape(N, F)

        # Batch tiling (static under jit).
        Np0 = _round_up(N, 8)
        if Np0 <= TBmax:
            if Np0 >= 8 * min_batch_tiles:
                TB = _round_up(-(-Np0 // min_batch_tiles), 8)
            else:
                TB = Np0
        else:
            TB = TBmax
        Np = _round_up(Np0, TB)

        xp = pad2(feats, Np, Fp).astype(cdt)
        grid = (Np // TB, Fp // TK)

        flops = 2 * N * (F * hidden + hidden * h2dim + h2dim * n_classes)
        bytes_accessed = int(
            xp.size * xp.dtype.itemsize
            + (Np // TB) * w1p.size * w1p.dtype.itemsize   # W1 re-streamed per batch tile
            + sum(t.size * t.dtype.itemsize for t in (w2p, w3p, b1p, b2p, b3p))
            + Np * Cp * 4)

        out_padded = pl.pallas_call(
            _mlp_kernel,
            out_shape=jax.ShapeDtypeStruct((Np, Cp), jnp.float32),
            grid_spec=pltpu.PrefetchScalarGridSpec(
                num_scalar_prefetch=0,
                grid=grid,
                in_specs=[
                    pl.BlockSpec((TB, TK), lambda i, k: (i, k)),   # x batch/K tile
                    pl.BlockSpec((TK, H1p), lambda i, k: (k, 0)),  # W1 K tile
                    _resident_spec((1, H1p)),                      # b1
                    _resident_spec((H1p, H2p)),                    # W2 (resident)
                    _resident_spec((1, H2p)),                      # b2
                    _resident_spec((H2p, Cp)),                     # W3 (resident)
                    _resident_spec((1, Cp)),                       # b3
                ],
                out_specs=pl.BlockSpec((TB, Cp), lambda i, k: (i, 0)),
                scratch_shapes=[pltpu.VMEM((TB, H1p), jnp.float32)],
            ),
            compiler_params=pltpu.CompilerParams(
                dimension_semantics=("parallel", "arbitrary"),
                vmem_limit_bytes=vmem_budget,
            ),
            cost_estimate=pl.CostEstimate(
                flops=flops, transcendentals=0, bytes_accessed=bytes_accessed),
        )(xp, w1p, b1p, w2p, b2p, w3p, b3p)

        return out_padded[:N, :n_classes]

    return forward, prepared


# ---------------------------------------------------------------------------
# Deterministic parameter init (PyTorch Linear default: U(-1/sqrt(fan_in), ..))
# Weights stored as (in, out) so the kernel computes x @ W + b.
# ---------------------------------------------------------------------------
def init_params(key, in_features, hidden_dim, n_classes):
    dims = [(in_features, hidden_dim),
            (hidden_dim, hidden_dim // 2),
            (hidden_dim // 2, n_classes)]
    params = []
    for (fan_in, fan_out) in dims:
        key, kw, kb = jax.random.split(key, 3)
        bound = 1.0 / np.sqrt(fan_in)
        w = jax.random.uniform(kw, (fan_in, fan_out), jnp.float32, -bound, bound)
        b = jax.random.uniform(kb, (1, fan_out), jnp.float32, -bound, bound)
        params += [w, b]
    return tuple(params)


if __name__ == "__main__":
    # Small shapes consistent with the module's forward.
    N, C, H, W = 2, 4, 16, 16
    POOL_SZ = 8
    HIDDEN = 32
    N_CLASSES = 10

    key = jax.random.PRNGKey(0)
    key, kx = jax.random.split(key)
    x = jax.random.normal(kx, (N, C, H, W), jnp.float32)
    params = init_params(key, C * POOL_SZ * POOL_SZ, HIDDEN, N_CLASSES)

    # Pure-JAX reference in the ORIGINAL op order (pool -> flatten -> MLP).
    a_ref = jnp.asarray(_adaptive_avg_matrix(H, POOL_SZ))
    b_ref = jnp.asarray(_adaptive_avg_matrix(W, POOL_SZ))
    pooled_ref = jnp.einsum("ph,nchw,qw->ncpq", a_ref, x, b_ref)
    feats_ref = pooled_ref.reshape(N, -1)
    w1, b1, w2, b2, w3, b3 = params
    h1 = jnp.maximum(feats_ref @ w1 + b1, 0.0)
    h2 = jnp.maximum(h1 @ w2 + b2, 0.0)
    ref = np.asarray(h2 @ w3 + b3)

    # Default path: bf16 weights/activations, f32 accumulation.
    fwd_fn, prep = make_pooled_mlp(params, C, (H, W), POOL_SZ, use_bf16=True)
    fwd = jax.jit(fwd_fn)
    out = jax.block_until_ready(fwd(x, *prep))
    assert out.shape == (N, N_CLASSES), out.shape
    np.testing.assert_allclose(np.asarray(out), ref, rtol=2e-2, atol=2e-2)

    # f32 path: tight tolerance against the PyTorch-order reference.
    fwd32_fn, prep32 = make_pooled_mlp(params, C, (H, W), POOL_SZ, use_bf16=False)
    out32 = jax.block_until_ready(jax.jit(fwd32_fn)(x, *prep32))
    np.testing.assert_allclose(np.asarray(out32), ref, rtol=1e-4, atol=1e-4)

    print("KERNEL_OK")
</pallas_src>

<mosaic_0001>
module attributes {stable_mosaic.version = 11 : i64} {
  func.func @_mlp_kernel(%arg0: i32, %arg1: i32, %arg2: memref<8x256xbf16, #tpu.memory_space<vmem>>, %arg3: memref<256x128xbf16, #tpu.memory_space<vmem>>, %arg4: memref<1x128xf32, #tpu.memory_space<vmem>>, %arg5: memref<128x128xbf16, #tpu.memory_space<vmem>>, %arg6: memref<1x128xf32, #tpu.memory_space<vmem>>, %arg7: memref<128x128xbf16, #tpu.memory_space<vmem>>, %arg8: memref<1x128xf32, #tpu.memory_space<vmem>>, %arg9: memref<8x128xf32, #tpu.memory_space<vmem>>, %arg10: memref<8x128xf32, #tpu.memory_space<vmem>>) attributes {dimension_semantics = [#tpu.dimension_semantics<parallel>, #tpu.dimension_semantics<arbitrary>], iteration_bounds = array<i64: 1, 1>, scalar_prefetch = 0 : i64, scratch_operands = 1 : i64, tpu.core_type = #tpu.core_type<tc>, window_params = [{transform_indices = @transform_0, window_bounds = array<i64: 8, 256>}, {transform_indices = @transform_1, window_bounds = array<i64: 256, 128>}, {pipeline_mode = #tpu.pipeline_mode<synchronous>, transform_indices = @transform_2, window_bounds = array<i64: 1, 128>}, {pipeline_mode = #tpu.pipeline_mode<synchronous>, transform_indices = @transform_3, window_bounds = array<i64: 128, 128>}, {pipeline_mode = #tpu.pipeline_mode<synchronous>, transform_indices = @transform_4, window_bounds = array<i64: 1, 128>}, {pipeline_mode = #tpu.pipeline_mode<synchronous>, transform_indices = @transform_5, window_bounds = array<i64: 128, 128>}, {pipeline_mode = #tpu.pipeline_mode<synchronous>, transform_indices = @transform_6, window_bounds = array<i64: 1, 128>}, {transform_indices = @transform_7, window_bounds = array<i64: 8, 128>}]} {
    %c0_i32 = arith.constant 0 : i32
    %0 = arith.cmpi eq, %arg1, %c0_i32 : i32
    %1 = arith.extui %0 : i1 to i32
    %c0_i32_0 = arith.constant 0 : i32
    %2 = arith.cmpi ne, %1, %c0_i32_0 : i32
    scf.if %2 {
      %cst_10 = arith.constant 0.000000e+00 : f32
      %12 = vector.broadcast %cst_10 : f32 to vector<8x128xf32>
      %c0_11 = arith.constant 0 : index
      %c0_12 = arith.constant 0 : index
      %13 = vector.load %arg10[%c0_11, %c0_12] : memref<8x128xf32, #tpu.memory_space<vmem>>, vector<8x128xf32>
      tpu.vector_store %arg10[%c0_11, %c0_12], %12 {strides = array<i32>} : memref<8x128xf32, #tpu.memory_space<vmem>>, vector<8x128xf32>,
    } else {
    }
    %c0 = arith.constant 0 : index
    %c0_1 = arith.constant 0 : index
    %3 = vector.load %arg10[%c0, %c0_1] : memref<8x128xf32, #tpu.memory_space<vmem>>, vector<8x128xf32>
    %c0_2 = arith.constant 0 : index
    %c0_3 = arith.constant 0 : index
    %4 = vector.load %arg2[%c0_2, %c0_3] : memref<8x256xbf16, #tpu.memory_space<vmem>>, vector<8x256xbf16>
    %c0_4 = arith.constant 0 : index
    %c0_5 = arith.constant 0 : index
    %5 = vector.load %arg3[%c0_4, %c0_5] : memref<256x128xbf16, #tpu.memory_space<vmem>>, vector<256x128xbf16>
    %cst = arith.constant dense<0.000000e+00> : vector<8x128xf32>
    %6 = tpu.matmul %4, %5, %cst {dimension_numbers = #tpu.dot_dimension_numbers<[1], [0], [0], [1], [0, 0, 1, 1], [], []>} : vector<8x256xbf16>, vector<256x128xbf16>, vector<8x128xf32> -> vector<8x128xf32>
    %7 = arith.addf %3, %6 : vector<8x128xf32>
    %c0_6 = arith.constant 0 : index
    %c0_7 = arith.constant 0 : index
    %8 = vector.load %arg10[%c0_6, %c0_7] : memref<8x128xf32, #tpu.memory_space<vmem>>, vector<8x128xf32>
    tpu.vector_store %arg10[%c0_6, %c0_7], %7 {strides = array<i32>} : memref<8x128xf32, #tpu.memory_space<vmem>>, vector<8x128xf32>,
    %c0_i32_8 = arith.constant 0 : i32
    %9 = arith.cmpi eq, %arg1, %c0_i32_8 : i32
    %10 = arith.extui %9 : i1 to i32
    %c0_i32_9 = arith.constant 0 : i32
    %11 = arith.cmpi ne, %10, %c0_i32_9 : i32
    scf.if %11 {
      %c0_10 = arith.constant 0 : index
      %c0_11 = arith.constant 0 : index
      %12 = vector.load %arg10[%c0_10, %c0_11] : memref<8x128xf32, #tpu.memory_space<vmem>>, vector<8x128xf32>
      %c0_12 = arith.constant 0 : index
      %c0_13 = arith.constant 0 : index
      %13 = vector.load %arg4[%c0_12, %c0_13] : memref<1x128xf32, #tpu.memory_space<vmem>>, vector<1x128xf32>
      %14 = vector.broadcast %13 : vector<1x128xf32> to vector<8x128xf32>
      %15 = arith.addf %12, %14 : vector<8x128xf32>
      %cst_14 = arith.constant 0.000000e+00 : f32
      %16 = vector.broadcast %cst_14 : f32 to vector<8x128xf32>
      %17 = arith.maximumf %15, %16 : vector<8x128xf32>
      %18 = arith.truncf %17 : vector<8x128xf32> to vector<8x128xbf16>
      %c0_15 = arith.constant 0 : index
      %c0_16 = arith.constant 0 : index
      %19 = vector.load %arg5[%c0_15, %c0_16] : memref<128x128xbf16, #tpu.memory_space<vmem>>, vector<128x128xbf16>
      %cst_17 = arith.constant dense<0.000000e+00> : vector<8x128xf32>
      %20 = tpu.matmul %18, %19, %cst_17 {dimension_numbers = #tpu.dot_dimension_numbers<[1], [0], [0], [1], [0, 0, 1, 1], [], []>} : vector<8x128xbf16>, vector<128x128xbf16>, vector<8x128xf32> -> vector<8x128xf32>
      %c0_18 = arith.constant 0 : index
      %c0_19 = arith.constant 0 : index
      %21 = vector.load %arg6[%c0_18, %c0_19] : memref<1x128xf32, #tpu.memory_space<vmem>>, vector<1x128xf32>
      %22 = vector.broadcast %21 : vector<1x128xf32> to vector<8x128xf32>
      %23 = arith.addf %20, %22 : vector<8x128xf32>
      %cst_20 = arith.constant 0.000000e+00 : f32
      %24 = vector.broadcast %cst_20 : f32 to vector<8x128xf32>
      %25 = arith.maximumf %23, %24 : vector<8x128xf32>
      %26 = arith.truncf %25 : vector<8x128xf32> to vector<8x128xbf16>
      %c0_21 = arith.constant 0 : index
      %c0_22 = arith.constant 0 : index
      %27 = vector.load %arg7[%c0_21, %c0_22] : memref<128x128xbf16, #tpu.memory_space<vmem>>, vector<128x128xbf16>
      %cst_23 = arith.constant dense<0.000000e+00> : vector<8x128xf32>
      %28 = tpu.matmul %26, %27, %cst_23 {dimension_numbers = #tpu.dot_dimension_numbers<[1], [0], [0], [1], [0, 0, 1, 1], [], []>} : vector<8x128xbf16>, vector<128x128xbf16>, vector<8x128xf32> -> vector<8x128xf32>
      %c0_24 = arith.constant 0 : index
      %c0_25 = arith.constant 0 : index
      %29 = vector.load %arg8[%c0_24, %c0_25] : memref<1x128xf32, #tpu.memory_space<vmem>>, vector<1x128xf32>
      %30 = vector.broadcast %29 : vector<1x128xf32> to vector<8x128xf32>
      %31 = arith.addf %28, %30 : vector<8x128xf32>
      %c0_26 = arith.constant 0 : index
      %c0_27 = arith.constant 0 : index
      %32 = vector.load %arg9[%c0_26, %c0_27] : memref<8x128xf32, #tpu.memory_space<vmem>>, vector<8x128xf32>
      tpu.vector_store %arg9[%c0_26, %c0_27], %31 {strides = array<i32>} : memref<8x128xf32, #tpu.memory_space<vmem>>, vector<8x128xf32>,
    } else {
    }
    return
  }
  func.func @transform_0(%arg0: i32, %arg1: i32) -> (i32, i32) {
    %c0_i32 = arith.constant 0 : i32
    return %arg0, %arg1 : i32, i32
  }
  func.func @transform_1(%arg0: i32, %arg1: i32) -> (i32, i32) {
    %c0_i32 = arith.constant 0 : i32
    %c0_i32_0 = arith.constant 0 : i32
    return %arg1, %c0_i32 : i32, i32
  }
  func.func @transform_2(%arg0: i32, %arg1: i32) -> (i32, i32) {
    %c0_i32 = arith.constant 0 : i32
    %c0_i32_0 = arith.constant 0 : i32
    %c0_i32_1 = arith.constant 0 : i32
    return %c0_i32, %c0_i32_0 : i32, i32
  }
  func.func @transform_3(%arg0: i32, %arg1: i32) -> (i32, i32) {
    %c0_i32 = arith.constant 0 : i32
    %c0_i32_0 = arith.constant 0 : i32
    %c0_i32_1 = arith.constant 0 : i32
    return %c0_i32, %c0_i32_0 : i32, i32
  }
  func.func @transform_4(%arg0: i32, %arg1: i32) -> (i32, i32) {
    %c0_i32 = arith.constant 0 : i32
    %c0_i32_0 = arith.constant 0 : i32
    %c0_i32_1 = arith.constant 0 : i32
    return %c0_i32, %c0_i32_0 : i32, i32
  }
  func.func @transform_5(%arg0: i32, %arg1: i32) -> (i32, i32) {
    %c0_i32 = arith.constant 0 : i32
    %c0_i32_0 = arith.constant 0 : i32
    %c0_i32_1 = arith.constant 0 : i32
    return %c0_i32, %c0_i32_0 : i32, i32
  }
  func.func @transform_6(%arg0: i32, %arg1: i32) -> (i32, i32) {
    %c0_i32 = arith.constant 0 : i32
    %c0_i32_0 = arith.constant 0 : i32
    %c0_i32_1 = arith.constant 0 : i32
    return %c0_i32, %c0_i32_0 : i32, i32
  }
  func.func @transform_7(%arg0: i32, %arg1: i32) -> (i32, i32) {
    %c0_i32 = arith.constant 0 : i32
    %c0_i32_0 = arith.constant 0 : i32
    return %arg0, %c0_i32 : i32, i32
  }
}

</mosaic_0001>

<bundles_post_ra>
// kernel: forward.1
= control target key start
LH: loop header
LB: loop body
LE: loop exit
PB: predicated region body
PF: predicated region fallthrough
CT: control target
= control target key end

     0   :  { %12 = vsyncpa [#allocation4], 0  ;;  %s649_s24 = smov [#allocation3]   ;;  %s811_s0 = inlined_call_operand.vmem [shape: bf16[8,256], index: 0, kind: input, shape index: {}]   ;;  %s812_s1 = inlined_call_operand.vmem [shape: bf16[256,128], index: 1, kind: input, shape index: {}]   ;;  %s813_s2 = inlined_call_operand.vmem [shape: f32[1,128], index: 2, kind: input, shape index: {}]   ;;  %s814_s3 = inlined_call_operand.vmem [shape: bf16[128,128], index: 3, kind: input, shape index: {}]   ;;  %s815_s4 = inlined_call_operand.vmem [shape: f32[1,128], index: 4, kind: input, shape index: {}]   ;;  %s816_s5 = inlined_call_operand.hbm [shape: bf16[128,128], index: 5, kind: input, shape index: {}]   ;;  %s817_s6 = inlined_call_operand.vmem [shape: f32[1,128], index: 6, kind: input, shape index: {}]   ;;  %s818_s7 = inlined_call_operand.vmem [shape: f32[8,128], index: 7, kind: output, shape index: {}]  }
   0x1   :  { %s28_s25 = sshll.u32 %s649_s24, 4  ;;  %s625_s28 = scalar_lea.hbm %s816_s5, 1024  ;;  %s29_s25 = int_to_ptr.vmem [resolvable:$true] %s28_s25 }
   0x2   :  { %p626_p0 = scmp.ne.s32.totalorder %s816_s5, %s625_s28  ;;  %p629_p1 = scmp.lt.u32.totalorder %s625_s28, %s816_s5 }
   0x4   :  { %p631_p2 = pnand %p629_p1, %p626_p0 }
   0x6   :  { %634 = shalt.err (!%p631_p2)
}
   0x7   :  { %s635_s10 = scalar_lea.vmem %s29_s25, 1024  ;;  %p640_p4 = scmp.lt.s32.totalorder %s29_s25, %s29_s25 }
   0x8   :  { %p636_p3 = scmp.ne.s32.totalorder %s29_s25, %s635_s10  ;;  %p641_p5 = scmp.lt.s32.totalorder %s635_s10, %s635_s10 }
   0xa   :  { %p642_p6 = por %p641_p5, %p640_p4 }
   0xc   :  { %p643_p7 = pnand %p642_p6, %p636_p3 }
   0xe   :  { %646 = shalt.err (!%p643_p7)
}
   0xf   :  { %s650_s11 = smov 64   ;;  %s651_s12 = smov 4  }
  0x10   :  { %34 = dma.hbm_to_vmem [thread:$0]  %s816_s5, 1024, %s29_s25, [#allocation4], %s650_s11, %s650_s11, %s651_s12  }
  0x11   :  { %647 = dma.done.wait [#allocation4], 1024  }
  0x12   :  { %648 = vsyncadd [#allocation4], 4294966272  ;;  %v652_v0 = vmov 0.0   ;;  %v591_v1 = vld [vmem:[%s812_s1 + $0x40] sm:$0xff]   ;;  %v593_v3 = vld [vmem:[%s812_s1 + $0x48] sm:$0xff]   ;;  %vm653_vm0 = vmmov 0  }
  0x13   :  { %546 = vmatprep.subr.bf16.mxu1 %v652_v0  ;;  %v592_v2 = vld [vmem:[%s812_s1] sm:$0xff]   ;;  %506 = vmatprep.subr.bf16.mxu0 %v591_v1  ;;  %v594_v4 = vld [vmem:[%s812_s1 + $0x8] sm:$0xff]   ;;  %v595_v5 = vld [vmem:[%s812_s1 + $0x50] sm:$0xff]  }
  0x14   :  { %507 = vmatpush3.bf16.msra.mxu0 %v592_v2  ;;  %v596_v6 = vld [vmem:[%s812_s1 + $0x10] sm:$0xff]   ;;  %v597_v7 = vld [vmem:[%s812_s1 + $0x58] sm:$0xff]   ;;  %v599_v9 = vld [vmem:[%s812_s1 + $0x60] sm:$0xff]   ;;  %562 = vmatprep.mubr.msk.bf16.mxu1 %vm653_vm0, %v652_v0 }
  0x15   :  { %508 = vmatprep.subr.bf16.mxu0 %v593_v3  ;;  %v598_v8 = vld [vmem:[%s812_s1 + $0x18] sm:$0xff]   ;;  %v600_v10 = vld [vmem:[%s812_s1 + $0x20] sm:$0xff]   ;;  %v601_v11 = vld [vmem:[%s812_s1 + $0x68] sm:$0xff]  }
  0x16   :  { %v47_v12 = vld [vmem:[%s811_s0] sm:$0xff]  ;;  %v602_v15 = vld [vmem:[%s812_s1 + $0x28] sm:$0xff]   ;;  %v603_v16 = vld [vmem:[%s812_s1 + $0x70] sm:$0xff]  }
  0x17   :  { %v470_v13 = vcombine.high %v47_v12, %v47_v12  ;;  %v609_v14 = vld [vmem:[%s814_s3] sm:$0xff]   ;;  %v610_v17 = vld [vmem:[%s814_s3 + $0x8] sm:$0xff]   ;;  %v604_v18 = vld [vmem:[%s812_s1 + $0x30] sm:$0xff]   ;;  %v469_v23 = vcombine.low %v47_v12, %v47_v12 }
  0x18   :  { %509 = vmatpush3.bf16.msra.mxu0 %v594_v4  ;;  %547 = vmatpush3.bf16.msra.mxu1 %v609_v14  ;;  %v605_v19 = vld [vmem:[%s812_s1 + $0x78] sm:$0xff]   ;;  %v611_v20 = vld [vmem:[%s814_s3 + $0x10] sm:$0xff]   ;;  %v613_v24 = vld [vmem:[%s814_s3 + $0x20] sm:$0xff]  }
  0x19   :  { %510 = vmatprep.subr.bf16.mxu0 %v595_v5  ;;  %215 = vmatprep.mubr.bf16.mxu0 %v470_v13  ;;  %v606_v21 = vld [vmem:[%s812_s1 + $0x38] sm:$0xff]   ;;  %v614_v25 = vld [vmem:[%s814_s3 + $0x28] sm:$0xff]   ;;  %v615_v26 = vld [vmem:[%s814_s3 + $0x30] sm:$0xff]  }
  0x1a   :  { %548 = vmatprep.subr.bf16.mxu1 %v652_v0  ;;  %v612_v22 = vld [vmem:[%s814_s3 + $0x18] sm:$0xff]   ;;  %v617_v28 = vld [vmem:[#allocation3] sm:$0xff]   ;;  %v618_v29 = vld [vmem:[#allocation3 + $0x8] sm:$0xff]  }
  0x1b   :  { %v616_v27 = vld [vmem:[%s814_s3 + $0x38] sm:$0xff]   ;;  %v619_v30 = vld [vmem:[#allocation3 + $0x10] sm:$0xff]   ;;  %v621_v32 = vld [vmem:[#allocation3 + $0x20] sm:$0xff]  }
  0x1c   :  { %511 = vmatpush3.bf16.msra.mxu0 %v596_v6  ;;  %549 = vmatpush3.bf16.msra.mxu1 %v610_v17  ;;  %v620_v31 = vld [vmem:[#allocation3 + $0x18] sm:$0xff]   ;;  %v622_v33 = vld [vmem:[#allocation3 + $0x28] sm:$0xff]   ;;  %v487_v36 = vld [vmem:[%s813_s2] ss:$0 sm:$0xff] }
  0x1d   :  { %512 = vmatprep.subr.bf16.mxu0 %v597_v7  ;;  %550 = vmatprep.subr.bf16.mxu1 %v652_v0  ;;  %v623_v43 = vld [vmem:[#allocation3 + $0x30] sm:$0xff]   ;;  %v624_v44 = vld [vmem:[#allocation3 + $0x38] sm:$0xff]   ;;  %v488_v45 = vld [vmem:[%s815_s4] ss:$0 sm:$0xff] }
  0x1e   :  { %v497_v53 = vld [vmem:[%s817_s6] ss:$0 sm:$0xff] }
  0x20   :  { %513 = vmatpush3.bf16.msra.mxu0 %v598_v8  ;;  %551 = vmatpush3.bf16.msra.mxu1 %v611_v20 }
  0x21   :  { %514 = vmatprep.subr.bf16.mxu0 %v599_v9  ;;  %552 = vmatprep.subr.bf16.mxu1 %v652_v0 }
  0x24   :  { %515 = vmatpush3.bf16.msra.mxu0 %v600_v10  ;;  %553 = vmatpush3.bf16.msra.mxu1 %v612_v22 }
  0x25   :  { %516 = vmatprep.subr.bf16.mxu0 %v601_v11  ;;  %554 = vmatprep.subr.bf16.mxu1 %v652_v0 }
  0x28   :  { %517 = vmatpush3.bf16.msra.mxu0 %v602_v15  ;;  %555 = vmatpush3.bf16.msra.mxu1 %v613_v24 }
  0x29   :  { %518 = vmatprep.subr.bf16.mxu0 %v603_v16  ;;  %556 = vmatprep.subr.bf16.mxu1 %v652_v0 }
  0x2c   :  { %519 = vmatpush3.bf16.msra.mxu0 %v604_v18  ;;  %557 = vmatpush3.bf16.msra.mxu1 %v614_v25 }
  0x2d   :  { %520 = vmatprep.subr.bf16.mxu0 %v605_v19  ;;  %558 = vmatprep.subr.bf16.mxu1 %v652_v0 }
  0x30   :  { %521 = vmatpush3.bf16.msra.mxu0 %v606_v21  ;;  %559 = vmatpush3.bf16.msra.mxu1 %v615_v26 }
  0x31   :  { %566 = vmatprep.subr.bf16.mxu0 %v652_v0  ;;  %560 = vmatprep.subr.bf16.mxu1 %v652_v0 }
  0x33   :  { %216 = vmatmul.mubr.bf16.vlgmr.msra.gmra.mrb[0].mxu0 %v469_v23 }
  0x34   :  { %561 = vmatpush3.bf16.msra.mxu1 %v616_v27  ;;  %582 = vmatprep.mubr.msk.bf16.mxu0 %vm653_vm0, %v652_v0 }
  0x35   :  { %567 = vmatpush3.bf16.msra.mxu0 %v617_v28 }
  0x36   :  { %568 = vmatprep.subr.bf16.mxu0 %v652_v0 }
  0x39   :  { %569 = vmatpush3.bf16.msra.mxu0 %v618_v29 }
  0x3a   :  { %570 = vmatprep.subr.bf16.mxu0 %v652_v0 }
  0x3d   :  { %571 = vmatpush3.bf16.msra.mxu0 %v619_v30 }
  0x3e   :  { %572 = vmatprep.subr.bf16.mxu0 %v652_v0 }
  0x41   :  { %573 = vmatpush3.bf16.msra.mxu0 %v620_v31 }
  0x42   :  { %574 = vmatprep.subr.bf16.mxu0 %v652_v0 }
  0x45   :  { %575 = vmatpush3.bf16.msra.mxu0 %v621_v32 }
  0x46   :  { %576 = vmatprep.subr.bf16.mxu0 %v652_v0 }
  0x49   :  { %577 = vmatpush3.bf16.msra.mxu0 %v622_v33 }
  0x4a   :  { %578 = vmatprep.subr.bf16.mxu0 %v652_v0 }
  0x4d   :  { %579 = vmatpush3.bf16.msra.mxu0 %v623_v43 }
  0x4e   :  { %580 = vmatprep.subr.bf16.mxu0 %v652_v0 }
  0x51   :  { %581 = vmatpush3.bf16.msra.mxu0 %v624_v44 }
 0x106   :  { %v522_v34 = vpop.f32.mrb[0].mxu0 }
 0x107   :  { %v523_v35 = vpop.f32.mrb[1].mxu0 }
 0x108   :  { %v524_v37 = vadd.f32 %v523_v35, %v522_v34  ;;  %v525_v38 = vpop.f32.mrb[2].mxu0 }
 0x109   :  { %v526_v39 = vpop.f32.mrb[3].mxu0 }
 0x10a   :  { %v236_v40 = vadd.f32 %v524_v37, %v487_v36 }
 0x10c   :  { %v237_v41 = vmax.f32 %v236_v40, 0.0 }
 0x10e   :  { %v238_v42 = vpack.c.bf16 %v237_v41, %v237_v41 }
 0x110   :  { %563 = vmatmul.mubr.bf16.vlgmr.msra.gmra.mrb[0].mxu1 %v238_v42 }
 0x1e3   :  { %v344_v46 = vpop.f32.mrb[0].mxu1 }
 0x1e4   :  { %v345_v47 = vadd.f32 %v488_v45, %v344_v46  ;;  %v564_v48 = vpop.f32.mrb[1].mxu1 }
 0x1e5   :  { %v347_v49 = vpop.f32.mrb[2].mxu1 }
 0x1e6   :  { %v350_v50 = vmax.f32 %v345_v47, 0.0  ;;  %v565_v51 = vpop.f32.mrb[3].mxu1 }
 0x1e8   :  { %v351_v52 = vpack.c.bf16 %v350_v50, %v350_v50 }
 0x1ea   :  { %583 = vmatmul.mubr.bf16.vlgmr.msra.gmra.mrb[4].mxu0 %v351_v52 }
 0x2bd   :  { %v457_v54 = vpop.f32.mrb[4].mxu0 }
 0x2be   :  { %v458_v55 = vadd.f32 %v497_v53, %v457_v54  ;;  %v584_v56 = vpop.f32.mrb[5].mxu0 }
 0x2bf   :  { %v460_v57 = vpop.f32.mrb[6].mxu0 }
 0x2c0   :  { %463 = vst [vmem:[%s818_s7] sm:$0xff] %v458_v55  ;;  %v585_v58 = vpop.f32.mrb[7].mxu0 }
 0x2c1   :  { %468 = vsyncpa [#allocation4], 1 }

</bundles_post_ra>
